<compile_context>
chip_gen: v6e
topology: v6e:2x2x1
jax: 0.10.0
libtpu: 0.0.40
codegen_flags: <defaults>
</compile_context>

<pallas_src>
import functools

import jax
import jax.numpy as jnp
from jax.experimental import pallas as pl
from jax.experimental.pallas import tpu as pltpu

P_DROP = 0.5
KEEP_SCALE = 1.0 / (1.0 - P_DROP)
# keep iff hash(bits) < threshold; clamped so P_DROP=0.0 cannot overflow uint32.
KEEP_THRESHOLD = min(int(round((1.0 - P_DROP) * (1 << 32))), (1 << 32) - 1)
BN_EPS = 1e-5


def _round_up(x, m):
    return (x + m - 1) // m * m


def _vmem_limit(nbytes):
    # 2x headroom for compiler-internal scratch; floor at the default scoped limit,
    # cap at v7x's 64 MiB physical VMEM.
    return int(min(max(2 * nbytes, 16 * 1024 * 1024), 64 * 1024 * 1024))


def _hash_u32(x):
    # splitmix32-style avalanche mixer; plain u32 VPU ops (no pltpu.prng_*), works
    # on TPU and in interpret mode.
    x = x ^ (x >> 16)
    x = x * jnp.uint32(0x7FEB352D)
    x = x ^ (x >> 15)
    x = x * jnp.uint32(0x846CA68B)
    x = x ^ (x >> 16)
    return x


# ---------------- Pass A: Linear (bf16 MXU) + PReLU + per-tile BN partial stats ----------------
def linear_prelu_stats_kernel(nvalid_ref, alpha_ref, x_ref, w_ref, b_ref,
                              y_ref, sum_ref, sumsq_ref, *, need_mask):
    i = pl.program_id(0)
    tm = x_ref.shape[0]

    # bf16 x bf16 -> f32 accumulation on the MXU (inputs cast once in the wrapper).
    y = jnp.dot(x_ref[...], w_ref[...], preferred_element_type=jnp.float32)
    y = y + b_ref[...]                                   # (tm, dp) + (1, dp), f32

    # PReLU (single learnable alpha, PyTorch default num_parameters=1)
    alpha = alpha_ref[0]
    y = jnp.where(y >= 0.0, y, alpha * y)
    y_ref[...] = y.astype(y_ref.dtype)                   # bf16 inter-pass activation

    # Per-tile BN partial statistics in f32 (computed before the bf16 downcast).
    # Padded batch rows (>= n_valid) contribute nothing; the mask is statically
    # skipped when the batch needed no padding.
    if need_mask:
        row = i * tm + jax.lax.broadcasted_iota(jnp.int32, (tm, 1), 0)
        ym = jnp.where(row < nvalid_ref[0], y, 0.0)
    else:
        ym = y
    # TODO(synk): E[x^2]-E[x]^2 can cancel for large-mean activations; switch to a
    #             centered accumulation if used at scale.
    sum_ref[0] = jnp.sum(ym, axis=0, keepdims=True)       # (1, dp)
    sumsq_ref[0] = jnp.sum(ym * ym, axis=0, keepdims=True)


# ---------------- Pass B: folded BatchNorm + dropout-keep-scale + dropout mask ----------------
def bn_dropout_kernel(seed_ref, y_ref, scale_ref, shift_ref, o_ref):
    i = pl.program_id(0)
    tm, dp = y_ref.shape

    # scale/shift already include gamma*rsqrt(var+eps), -mean*scale+beta and the
    # dropout 1/(1-p) factor -> one FMA per element, in f32.
    z = y_ref[...].astype(jnp.float32) * scale_ref[...] + shift_ref[...]

    # Counter-based dropout: hash(seed, global element index) vs threshold.
    # Scalar base + one vector mul; mask is tiling-independent (pure fn of row*dp+col).
    base = (i * (tm * dp)).astype(jnp.uint32)
    r = jax.lax.broadcasted_iota(jnp.int32, (tm, dp), 0)
    c = jax.lax.broadcasted_iota(jnp.int32, (tm, dp), 1)
    idx = base + (r * dp + c).astype(jnp.uint32)
    bits = _hash_u32(idx ^ (seed_ref[0].astype(jnp.uint32) * jnp.uint32(0x9E3779B9)))
    keep = bits < jnp.uint32(KEEP_THRESHOLD)
    o_ref[...] = jnp.where(keep, z, 0.0).astype(o_ref.dtype)


def prepare_linear_params(w, b):
    """Pad + transpose + cast the nn.Linear params once (cache across forward calls).
    w: [D_out, D_in] (torch layout), b: [D_out]. Returns (wp [dip, dp] bf16, bp [1, dp] f32)."""
    d_out, d_in = w.shape
    dip = _round_up(d_in, 128)
    dp = _round_up(d_out, 128)
    wp = jnp.zeros((dip, dp), jnp.bfloat16).at[:d_in, :d_out].set(
        jnp.asarray(w, jnp.float32).T.astype(jnp.bfloat16))
    bp = jnp.zeros((1, dp), jnp.float32).at[0, :d_out].set(jnp.asarray(b, jnp.float32))
    return wp, bp


@functools.partial(jax.jit, static_argnames=("d_out", "tile_m", "tile_m_b"))
def mlp_block(x, wp, bp, alpha, gamma, beta, seed, *, d_out, tile_m=256, tile_m_b=1024):
    """Training-mode MLPBlock forward.
    x: [N, D_in] f32; wp/bp: from prepare_linear_params; gamma/beta: [d_out] BN affine;
    alpha: PReLU scalar; seed: int32 dropout seed (vary per step). Returns [N, d_out] f32."""
    N, D_in = x.shape
    dip, dp = wp.shape
    f32 = jnp.float32

    # ---- batch tiling ----
    n8 = _round_up(N, 8)
    if n8 <= tile_m:
        tm_a = n8
        n_pad = n8
    else:
        tm_a = tile_m
        n_pad = _round_up(N, tm_a)
    num_a = n_pad // tm_a
    # Pass B is purely mem-bound: group Pass-A tiles into larger tiles (~tile_m_b rows).
    g = max(k for k in (8, 4, 2, 1) if num_a % k == 0 and k * tm_a <= max(tile_m_b, tm_a))
    tm_b = g * tm_a
    num_b = num_a // g

    # Lane-dense bf16 input (cast once here, not per grid step).
    xp = jnp.zeros((n_pad, dip), jnp.bfloat16).at[:N, :D_in].set(x.astype(jnp.bfloat16))

    alpha_s = jnp.asarray(alpha, f32).reshape(1)
    seed_s = jnp.asarray(seed, jnp.int32).reshape(1)
    nvalid = jnp.array([N], jnp.int32)

    smem = pl.BlockSpec(memory_space=pltpu.MemorySpace.SMEM)

    vmem_a = _vmem_limit(2 * tm_a * dip * 2      # x tile (bf16, double-buffered)
                         + dip * dp * 2          # W (bf16, single-buffered)
                         + dp * 4                # bias (single-buffered)
                         + 2 * tm_a * dp * 2     # y out tile (bf16, double-buffered)
                         + 2 * 2 * dp * 4)       # sum/sumsq out tiles
    vmem_b = _vmem_limit(2 * tm_b * dp * 2       # y in tile (bf16, double-buffered)
                         + 2 * dp * 4            # scale/shift (single-buffered)
                         + 2 * tm_b * dp * 4)    # out tile (f32, double-buffered)

    # ---- Pass A: tiled Linear + PReLU, per-tile BN partials ----
    # TODO(synk): for very large D on v7x (64 MiB VMEM), add a D_out-column grid axis
    #             so only a (dip, tn) slab of W is resident per step.
    kernel_a = functools.partial(linear_prelu_stats_kernel, need_mask=(n_pad != N))
    y, ssum, ssq = pl.pallas_call(
        kernel_a,
        grid=(num_a,),
        in_specs=[
            smem,                                            # n_valid (scalar)
            smem,                                            # alpha (scalar)
            pl.BlockSpec((tm_a, dip), lambda i: (i, 0)),     # x tile
            pl.BlockSpec((dip, dp), lambda i: (0, 0),
                         pipeline_mode=pl.Buffered(1)),      # W resident, single buffer
            pl.BlockSpec((1, dp), lambda i: (0, 0),
                         pipeline_mode=pl.Buffered(1)),      # b resident, single buffer
        ],
        out_specs=[
            pl.BlockSpec((tm_a, dp), lambda i: (i, 0)),      # pre-BN activations (bf16)
            pl.BlockSpec((1, 1, dp), lambda i: (i, 0, 0)),   # per-tile sum
            pl.BlockSpec((1, 1, dp), lambda i: (i, 0, 0)),   # per-tile sum of squares
        ],
        out_shape=[
            jax.ShapeDtypeStruct((n_pad, dp), jnp.bfloat16),
            jax.ShapeDtypeStruct((num_a, 1, dp), f32),
            jax.ShapeDtypeStruct((num_a, 1, dp), f32),
        ],
        compiler_params=pltpu.CompilerParams(
            dimension_semantics=("parallel",), vmem_limit_bytes=vmem_a),
    )(nvalid, alpha_s, xp, wp, bp)

    # ---- Tiny cross-tile reduction; fold BN + dropout keep-scale into scale/shift ----
    gp = jnp.zeros((dp,), f32).at[:d_out].set(jnp.asarray(gamma, f32))
    btp = jnp.zeros((dp,), f32).at[:d_out].set(jnp.asarray(beta, f32))
    n = jnp.float32(N)
    mean = jnp.sum(ssum[:, 0, :], axis=0) / n
    var = jnp.maximum(jnp.sum(ssq[:, 0, :], axis=0) / n - mean * mean, 0.0)  # biased (torch train)
    g_inv = gp * jax.lax.rsqrt(var + BN_EPS)
    scale = (KEEP_SCALE * g_inv).reshape(1, dp)
    shift = (KEEP_SCALE * (btp - mean * g_inv)).reshape(1, dp)

    # ---- Pass B: folded BN + dropout (mem-bound; big tiles) ----
    # Note: y (bf16) and out (f32) dtypes differ, so input_output_aliases is not applicable.
    out = pl.pallas_call(
        bn_dropout_kernel,
        grid=(num_b,),
        in_specs=[
            smem,                                            # seed (scalar)
            pl.BlockSpec((tm_b, dp), lambda i: (i, 0)),      # y tile (bf16)
            pl.BlockSpec((1, dp), lambda i: (0, 0),
                         pipeline_mode=pl.Buffered(1)),      # scale resident
            pl.BlockSpec((1, dp), lambda i: (0, 0),
                         pipeline_mode=pl.Buffered(1)),      # shift resident
        ],
        out_specs=pl.BlockSpec((tm_b, dp), lambda i: (i, 0)),
        out_shape=jax.ShapeDtypeStruct((n_pad, dp), f32),
        compiler_params=pltpu.CompilerParams(
            dimension_semantics=("parallel",), vmem_limit_bytes=vmem_b),
    )(seed_s, y, scale, shift)

    return out[:N, :d_out]


if __name__ == "__main__":
    key = jax.random.PRNGKey(0)
    k_x, k_w, k_b = jax.random.split(key, 3)

    N, D_in, D_out = 16, 32, 64

    # Deterministic parameter init (shapes from MLPBlock.__init__).
    bound = 1.0 / (D_in ** 0.5)
    w = jax.random.uniform(k_w, (D_out, D_in), jnp.float32, -bound, bound)  # nn.Linear.weight
    b = jax.random.uniform(k_b, (D_out,), jnp.float32, -bound, bound)       # nn.Linear.bias
    alpha = jnp.float32(0.25)                      # nn.PReLU default init
    gamma = jnp.ones((D_out,), jnp.float32)        # BatchNorm1d.weight
    beta = jnp.zeros((D_out,), jnp.float32)        # BatchNorm1d.bias
    seed = jnp.int32(42)                           # dropout seed (vary per step in training)

    x = jax.random.normal(k_x, (N, D_in), jnp.float32)

    wp, bp = prepare_linear_params(w, b)           # hoisted/cached weight prep
    out = mlp_block(x, wp, bp, alpha, gamma, beta, seed, d_out=D_out)
    jax.block_until_ready(out)
    assert out.shape == (N, D_out) and out.dtype == jnp.float32

    # Sanity check vs f32 reference: every kept (non-zero) element must equal
    # 2 * BN(PReLU(Linear(x))). bf16 matmul + bf16 inter-pass activation loosen
    # numerics, hence bf16-scale tolerances.
    lin = x @ w.T + b
    act = jnp.where(lin >= 0, lin, alpha * lin)
    mean = act.mean(axis=0)
    var = ((act - mean) ** 2).mean(axis=0)
    ref = (act - mean) * jax.lax.rsqrt(var + BN_EPS) * gamma + beta
    kept = out != 0
    assert jnp.allclose(jnp.where(kept, out, 2.0 * ref), 2.0 * ref, rtol=0.1, atol=0.2)
    drop_frac = 1.0 - float(jnp.mean(kept.astype(jnp.float32)))
    assert 0.2 < drop_frac < 0.8   # dropout actually dropping roughly half

    print("KERNEL_OK")
</pallas_src>

<mosaic_0001>
module attributes {stable_mosaic.version = 11 : i64} {
  func.func @linear_prelu_stats_kernel(%arg0: i32, %arg1: memref<1xi32, #tpu.memory_space<smem>>, %arg2: memref<1xf32, #tpu.memory_space<smem>>, %arg3: memref<16x128xbf16, #tpu.memory_space<vmem>>, %arg4: memref<128x128xbf16, #tpu.memory_space<vmem>>, %arg5: memref<1x128xf32, #tpu.memory_space<vmem>>, %arg6: memref<16x128xbf16, #tpu.memory_space<vmem>>, %arg7: memref<1x1x128xf32, #tpu.memory_space<vmem>>, %arg8: memref<1x1x128xf32, #tpu.memory_space<vmem>>) attributes {dimension_semantics = [#tpu.dimension_semantics<parallel>], iteration_bounds = array<i64: 1>, scalar_prefetch = 0 : i64, scratch_operands = 0 : i64, tpu.core_type = #tpu.core_type<tc>, window_params = [{transform_indices = @transform_0, window_bounds = array<i64: 1>}, {transform_indices = @transform_1, window_bounds = array<i64: 1>}, {transform_indices = @transform_2, window_bounds = array<i64: 16, 128>}, {pipeline_mode = #tpu.pipeline_mode<synchronous>, transform_indices = @transform_3, window_bounds = array<i64: 128, 128>}, {pipeline_mode = #tpu.pipeline_mode<synchronous>, transform_indices = @transform_4, window_bounds = array<i64: 1, 128>}, {transform_indices = @transform_5, window_bounds = array<i64: 16, 128>}, {transform_indices = @transform_6, window_bounds = array<i64: 1, 1, 128>}, {transform_indices = @transform_7, window_bounds = array<i64: 1, 1, 128>}]} {
    %c0 = arith.constant 0 : index
    %c0_0 = arith.constant 0 : index
    %0 = vector.load %arg3[%c0, %c0_0] : memref<16x128xbf16, #tpu.memory_space<vmem>>, vector<16x128xbf16>
    %c0_1 = arith.constant 0 : index
    %c0_2 = arith.constant 0 : index
    %1 = vector.load %arg4[%c0_1, %c0_2] : memref<128x128xbf16, #tpu.memory_space<vmem>>, vector<128x128xbf16>
    %cst = arith.constant dense<0.000000e+00> : vector<16x128xf32>
    %2 = tpu.matmul %0, %1, %cst {dimension_numbers = #tpu.dot_dimension_numbers<[1], [0], [0], [1], [0, 0, 1, 1], [], []>} : vector<16x128xbf16>, vector<128x128xbf16>, vector<16x128xf32> -> vector<16x128xf32>
    %c0_3 = arith.constant 0 : index
    %c0_4 = arith.constant 0 : index
    %3 = vector.load %arg5[%c0_3, %c0_4] : memref<1x128xf32, #tpu.memory_space<vmem>>, vector<1x128xf32>
    %4 = vector.broadcast %3 : vector<1x128xf32> to vector<16x128xf32>
    %5 = arith.addf %2, %4 : vector<16x128xf32>
    %c0_5 = arith.constant 0 : index
    %6 = memref.load %arg2[%c0_5] : memref<1xf32, #tpu.memory_space<smem>>
    %cst_6 = arith.constant 0.000000e+00 : f32
    %7 = vector.broadcast %cst_6 : f32 to vector<16x128xf32>
    %8 = arith.cmpf oge, %5, %7 : vector<16x128xf32>
    %9 = vector.broadcast %6 : f32 to vector<16x128xf32>
    %10 = arith.mulf %9, %5 : vector<16x128xf32>
    %11 = arith.select %8, %5, %10 : vector<16x128xi1>, vector<16x128xf32>
    %12 = arith.truncf %11 : vector<16x128xf32> to vector<16x128xbf16>
    %c0_7 = arith.constant 0 : index
    %c0_8 = arith.constant 0 : index
    %13 = vector.load %arg6[%c0_7, %c0_8] : memref<16x128xbf16, #tpu.memory_space<vmem>>, vector<16x128xbf16>
    tpu.vector_store %arg6[%c0_7, %c0_8], %12 {strides = array<i32>} : memref<16x128xbf16, #tpu.memory_space<vmem>>, vector<16x128xbf16>,
    %cst_9 = arith.constant dense<0.000000e+00> : vector<128xf32>
    %14 = vector.multi_reduction <add>, %11, %cst_9 [0] : vector<16x128xf32> to vector<128xf32>
    %15 = vector.shape_cast %14 : vector<128xf32> to vector<1x128xf32>
    %c0_10 = arith.constant 0 : index
    %c0_11 = arith.constant 0 : index
    %c0_12 = arith.constant 0 : index
    %16 = vector.load %arg7[%c0_10, %c0_11, %c0_12] : memref<1x1x128xf32, #tpu.memory_space<vmem>>, vector<1x1x128xf32>
    %17 = vector.shape_cast %16 : vector<1x1x128xf32> to vector<1x128xf32>
    %18 = vector.shape_cast %15 : vector<1x128xf32> to vector<1x1x128xf32>
    tpu.vector_store %arg7[%c0_10, %c0_11, %c0_12], %18 {strides = array<i32>} : memref<1x1x128xf32, #tpu.memory_space<vmem>>, vector<1x1x128xf32>,
    %19 = arith.mulf %11, %11 : vector<16x128xf32>
    %cst_13 = arith.constant dense<0.000000e+00> : vector<128xf32>
    %20 = vector.multi_reduction <add>, %19, %cst_13 [0] : vector<16x128xf32> to vector<128xf32>
    %21 = vector.shape_cast %20 : vector<128xf32> to vector<1x128xf32>
    %c0_14 = arith.constant 0 : index
    %c0_15 = arith.constant 0 : index
    %c0_16 = arith.constant 0 : index
    %22 = vector.load %arg8[%c0_14, %c0_15, %c0_16] : memref<1x1x128xf32, #tpu.memory_space<vmem>>, vector<1x1x128xf32>
    %23 = vector.shape_cast %22 : vector<1x1x128xf32> to vector<1x128xf32>
    %24 = vector.shape_cast %21 : vector<1x128xf32> to vector<1x1x128xf32>
    tpu.vector_store %arg8[%c0_14, %c0_15, %c0_16], %24 {strides = array<i32>} : memref<1x1x128xf32, #tpu.memory_space<vmem>>, vector<1x1x128xf32>,
    return
  }
  func.func @transform_0(%arg0: i32) -> i32 {
    %c0_i32 = arith.constant 0 : i32
    %c0_i32_0 = arith.constant 0 : i32
    return %c0_i32 : i32
  }
  func.func @transform_1(%arg0: i32) -> i32 {
    %c0_i32 = arith.constant 0 : i32
    %c0_i32_0 = arith.constant 0 : i32
    return %c0_i32 : i32
  }
  func.func @transform_2(%arg0: i32) -> (i32, i32) {
    %c0_i32 = arith.constant 0 : i32
    %c0_i32_0 = arith.constant 0 : i32
    return %arg0, %c0_i32 : i32, i32
  }
  func.func @transform_3(%arg0: i32) -> (i32, i32) {
    %c0_i32 = arith.constant 0 : i32
    %c0_i32_0 = arith.constant 0 : i32
    %c0_i32_1 = arith.constant 0 : i32
    return %c0_i32, %c0_i32_0 : i32, i32
  }
  func.func @transform_4(%arg0: i32) -> (i32, i32) {
    %c0_i32 = arith.constant 0 : i32
    %c0_i32_0 = arith.constant 0 : i32
    %c0_i32_1 = arith.constant 0 : i32
    return %c0_i32, %c0_i32_0 : i32, i32
  }
  func.func @transform_5(%arg0: i32) -> (i32, i32) {
    %c0_i32 = arith.constant 0 : i32
    %c0_i32_0 = arith.constant 0 : i32
    return %arg0, %c0_i32 : i32, i32
  }
  func.func @transform_6(%arg0: i32) -> (i32, i32, i32) {
    %c0_i32 = arith.constant 0 : i32
    %c0_i32_0 = arith.constant 0 : i32
    %c0_i32_1 = arith.constant 0 : i32
    return %arg0, %c0_i32, %c0_i32_0 : i32, i32, i32
  }
  func.func @transform_7(%arg0: i32) -> (i32, i32, i32) {
    %c0_i32 = arith.constant 0 : i32
    %c0_i32_0 = arith.constant 0 : i32
    %c0_i32_1 = arith.constant 0 : i32
    return %arg0, %c0_i32, %c0_i32_0 : i32, i32, i32
  }
}

module attributes {stable_mosaic.version = 11 : i64} {
  func.func @bn_dropout_kernel(%arg0: i32, %arg1: memref<1xi32, #tpu.memory_space<smem>>, %arg2: memref<16x128xbf16, #tpu.memory_space<vmem>>, %arg3: memref<1x128xf32, #tpu.memory_space<vmem>>, %arg4: memref<1x128xf32, #tpu.memory_space<vmem>>, %arg5: memref<16x128xf32, #tpu.memory_space<vmem>>) attributes {dimension_semantics = [#tpu.dimension_semantics<parallel>], iteration_bounds = array<i64: 1>, scalar_prefetch = 0 : i64, scratch_operands = 0 : i64, tpu.core_type = #tpu.core_type<tc>, window_params = [{transform_indices = @transform_0, window_bounds = array<i64: 1>}, {transform_indices = @transform_1, window_bounds = array<i64: 16, 128>}, {pipeline_mode = #tpu.pipeline_mode<synchronous>, transform_indices = @transform_2, window_bounds = array<i64: 1, 128>}, {pipeline_mode = #tpu.pipeline_mode<synchronous>, transform_indices = @transform_3, window_bounds = array<i64: 1, 128>}, {transform_indices = @transform_4, window_bounds = array<i64: 16, 128>}]} {
    %c0 = arith.constant 0 : index
    %c0_0 = arith.constant 0 : index
    %0 = vector.load %arg2[%c0, %c0_0] : memref<16x128xbf16, #tpu.memory_space<vmem>>, vector<16x128xbf16>
    %1 = arith.extf %0 : vector<16x128xbf16> to vector<16x128xf32>
    %c0_1 = arith.constant 0 : index
    %c0_2 = arith.constant 0 : index
    %2 = vector.load %arg3[%c0_1, %c0_2] : memref<1x128xf32, #tpu.memory_space<vmem>>, vector<1x128xf32>
    %3 = vector.broadcast %2 : vector<1x128xf32> to vector<16x128xf32>
    %4 = arith.mulf %1, %3 : vector<16x128xf32>
    %c0_3 = arith.constant 0 : index
    %c0_4 = arith.constant 0 : index
    %5 = vector.load %arg4[%c0_3, %c0_4] : memref<1x128xf32, #tpu.memory_space<vmem>>, vector<1x128xf32>
    %6 = vector.broadcast %5 : vector<1x128xf32> to vector<16x128xf32>
    %7 = arith.addf %4, %6 : vector<16x128xf32>
    %c2048_i32 = arith.constant 2048 : i32
    %8 = arith.muli %arg0, %c2048_i32 : i32
    %9 = tpu.iota {dimensions = array<i32: 0>} : vector<16x128xi32>
    %10 = tpu.iota {dimensions = array<i32: 1>} : vector<16x128xi32>
    %c128_i32 = arith.constant 128 : i32
    %11 = vector.broadcast %c128_i32 : i32 to vector<16x128xi32>
    %12 = arith.muli %9, %11 : vector<16x128xi32>
    %13 = arith.addi %12, %10 : vector<16x128xi32>
    %14 = vector.broadcast %8 : i32 to vector<16x128xi32>
    %15 = arith.addi %14, %13 : vector<16x128xi32>
    %c0_5 = arith.constant 0 : index
    %16 = memref.load %arg1[%c0_5] : memref<1xi32, #tpu.memory_space<smem>>
    %c-1640531527_i32 = arith.constant -1640531527 : i32
    %17 = arith.muli %16, %c-1640531527_i32 : i32
    %18 = vector.broadcast %17 : i32 to vector<16x128xi32>
    %19 = arith.xori %15, %18 : vector<16x128xi32>
    %c16_i32 = arith.constant 16 : i32
    %20 = vector.broadcast %c16_i32 : i32 to vector<16x128xi32>
    %21 = arith.shrui %19, %20 : vector<16x128xi32>
    %22 = arith.xori %19, %21 : vector<16x128xi32>
    %c2146121005_i32 = arith.constant 2146121005 : i32
    %23 = vector.broadcast %c2146121005_i32 : i32 to vector<16x128xi32>
    %24 = arith.muli %22, %23 : vector<16x128xi32>
    %c15_i32 = arith.constant 15 : i32
    %25 = vector.broadcast %c15_i32 : i32 to vector<16x128xi32>
    %26 = arith.shrui %24, %25 : vector<16x128xi32>
    %27 = arith.xori %24, %26 : vector<16x128xi32>
    %c-2073254261_i32 = arith.constant -2073254261 : i32
    %28 = vector.broadcast %c-2073254261_i32 : i32 to vector<16x128xi32>
    %29 = arith.muli %27, %28 : vector<16x128xi32>
    %c16_i32_6 = arith.constant 16 : i32
    %30 = vector.broadcast %c16_i32_6 : i32 to vector<16x128xi32>
    %31 = arith.shrui %29, %30 : vector<16x128xi32>
    %32 = arith.xori %29, %31 : vector<16x128xi32>
    %c-2147483648_i32 = arith.constant -2147483648 : i32
    %33 = vector.broadcast %c-2147483648_i32 : i32 to vector<16x128xi32>
    %34 = arith.cmpi ult, %32, %33 : vector<16x128xi32>
    %cst = arith.constant 0.000000e+00 : f32
    %35 = vector.broadcast %cst : f32 to vector<16x128xf32>
    %36 = arith.select %34, %7, %35 : vector<16x128xi1>, vector<16x128xf32>
    %c0_7 = arith.constant 0 : index
    %c0_8 = arith.constant 0 : index
    %37 = vector.load %arg5[%c0_7, %c0_8] : memref<16x128xf32, #tpu.memory_space<vmem>>, vector<16x128xf32>
    tpu.vector_store %arg5[%c0_7, %c0_8], %36 {strides = array<i32>} : memref<16x128xf32, #tpu.memory_space<vmem>>, vector<16x128xf32>,
    return
  }
  func.func @transform_0(%arg0: i32) -> i32 {
    %c0_i32 = arith.constant 0 : i32
    %c0_i32_0 = arith.constant 0 : i32
    return %c0_i32 : i32
  }
  func.func @transform_1(%arg0: i32) -> (i32, i32) {
    %c0_i32 = arith.constant 0 : i32
    %c0_i32_0 = arith.constant 0 : i32
    return %arg0, %c0_i32 : i32, i32
  }
  func.func @transform_2(%arg0: i32) -> (i32, i32) {
    %c0_i32 = arith.constant 0 : i32
    %c0_i32_0 = arith.constant 0 : i32
    %c0_i32_1 = arith.constant 0 : i32
    return %c0_i32, %c0_i32_0 : i32, i32
  }
  func.func @transform_3(%arg0: i32) -> (i32, i32) {
    %c0_i32 = arith.constant 0 : i32
    %c0_i32_0 = arith.constant 0 : i32
    %c0_i32_1 = arith.constant 0 : i32
    return %c0_i32, %c0_i32_0 : i32, i32
  }
  func.func @transform_4(%arg0: i32) -> (i32, i32) {
    %c0_i32 = arith.constant 0 : i32
    %c0_i32_0 = arith.constant 0 : i32
    return %arg0, %c0_i32 : i32, i32
  }
}

</mosaic_0001>

<bundles_post_ra>
// kernel: mlp_block.3
= control target key start
LH: loop header
LB: loop body
LE: loop exit
PB: predicated region body
PF: predicated region fallthrough
CT: control target
= control target key end

     0   :  { %v42_v0 = vlaneseq  ;;  %s171_s0 = inlined_call_operand.<no memory space> [shape: s32[1], index: 0, kind: input, shape index: {}]   ;;  %s172_s1 = inlined_call_operand.vmem [shape: bf16[16,128], index: 1, kind: input, shape index: {}]   ;;  %s173_s2 = inlined_call_operand.vmem [shape: f32[1,128], index: 2, kind: input, shape index: {}]   ;;  %s174_s3 = inlined_call_operand.vmem [shape: f32[1,128], index: 3, kind: input, shape index: {}]   ;;  %s175_s4 = inlined_call_operand.hbm [shape: f32[16,128], index: 4, kind: output, shape index: {}]  }
   0x1   :  { %s55_s17 = smul.u32 2654435769, %s171_s0 }
   0x2   :  { %10 = vsyncpa [#allocation4], 0  ;;  %v43_v1 = vshrl.u32 %v42_v0, 7  ;;  %v46_v2 = vand.u32 127, %v42_v0  ;;  %v100_v12 = vld [vmem:[%s172_s1] sm:$0xff]   ;;  %s128_s1 = smov [#allocation3]  }
   0x3   :  { %v56_v5 = vstv %s55_s17  ;;  %v101_v17 = vunpack.c.l.bf16 %v100_v12  ;;  %v97_v18 = vld [vmem:[%s173_s2] ss:$0 sm:$0xff]  ;;  %v102_v21 = vunpack.c.h.bf16 %v100_v12  ;;  %s86_s2 = sshll.u32 %s128_s1, 4  ;;  %s87_s2 = int_to_ptr.vmem [resolvable:$true] %s86_s2 }
   0x4   :  { %v47_v3 = vmul.u32 128, %v43_v1  ;;  %v44_v4 = vadd.s32 8, %v43_v1  ;;  %v98_v25 = vld [vmem:[%s174_s3] ss:$0 sm:$0xff]  ;;  %s106_s3 = scalar_lea.vmem %s87_s2, 256  ;;  %p111_p1 = scmp.lt.s32.totalorder %s87_s2, %s87_s2 }
   0x5   :  { %v30_v24 = vmul.f32 %v101_v17, %v97_v18  ;;  %v31_v28 = vmul.f32 %v102_v21, %v97_v18  ;;  %p107_p0 = scmp.ne.s32.totalorder %s87_s2, %s106_s3  ;;  %p112_p2 = scmp.lt.s32.totalorder %s106_s3, %s106_s3 }
   0x6   :  { %v49_v6 = vadd.s32 %v47_v3, %v46_v2  ;;  %v48_v7 = vmul.u32 128, %v44_v4 }
   0x7   :  { %v39_v31 = vadd.f32 %v98_v25, %v30_v24  ;;  %v40_v34 = vadd.f32 %v98_v25, %v31_v28  ;;  %p113_p3 = por %p112_p2, %p111_p1 }
   0x8   :  { %v57_v8 = vxor.u32 %v56_v5, %v49_v6  ;;  %v50_v9 = vadd.s32 %v48_v7, %v46_v2 }
   0x9   :  { %p114_p4 = pnand %p113_p3, %p107_p0 }
   0xa   :  { %v59_v10 = vshrl.u32 %v57_v8, 16  ;;  %v58_v11 = vxor.u32 %v56_v5, %v50_v9 }
   0xc   :  { %v61_v13 = vxor.u32 %v59_v10, %v57_v8  ;;  %v60_v14 = vshrl.u32 %v58_v11, 16 }
   0xe   :  { %v63_v15 = vmul.u32 2146121005, %v61_v13  ;;  %v62_v16 = vxor.u32 %v60_v14, %v58_v11 }
  0x10   :  { %v65_v19 = vshrl.u32 %v63_v15, 15  ;;  %v64_v20 = vmul.u32 2146121005, %v62_v16 }
  0x12   :  { %v67_v22 = vxor.u32 %v65_v19, %v63_v15  ;;  %v66_v23 = vshrl.u32 %v64_v20, 15 }
  0x14   :  { %v69_v26 = vmul.u32 2221713035, %v67_v22  ;;  %v68_v27 = vxor.u32 %v66_v23, %v64_v20 }
  0x16   :  { %v71_v29 = vshrl.u32 %v69_v26, 16  ;;  %v70_v30 = vmul.u32 2221713035, %v68_v27 }
  0x18   :  { %v73_v32 = vxor.u32 %v71_v29, %v69_v26  ;;  %v72_v33 = vshrl.u32 %v70_v30, 16 }
  0x1a   :  { %vm75_vm0 = vcmp.lt.u32.totalorder %v73_v32, 2147483648  ;;  %v74_v35 = vxor.u32 %v72_v33, %v70_v30 }
  0x1b   :  { %v77_v36 = vsel %vm75_vm0, %v39_v31, 0.0 }
  0x1c   :  { %79 = vst [vmem:[#allocation3] sm:$0xff] %v77_v36  ;;  %vm76_vm1 = vcmp.lt.u32.totalorder %v74_v35, 2147483648 }
  0x1d   :  { %v78_v37 = vsel %vm76_vm1, %v40_v34, 0.0 }
  0x1e   :  { %80 = vst [vmem:[#allocation3 + $0x8] sm:$0xff] %v78_v37 }
  0x1f   :  { %117 = shalt.err (!%p114_p4)
}
  0x20   :  { %s129_s23 = smov 128   ;;  %s130_s24 = smov 8  }
  0x21   :  { %92 = dma.vmem_to_hbm [thread:$0]  %s87_s2, 256, %s175_s4, [#allocation4], %s129_s23, %s129_s23, %s130_s24  }
  0x22   :  { %126 = dma.done.wait [#allocation4], 256  }
  0x23   :  { %127 = vsyncadd [#allocation4], 4294967040 }
  0x24   :  { %96 = vsyncpa [#allocation4], 1 }

// kernel: mlp_block.2
= control target key start
LH: loop header
LB: loop body
LE: loop exit
PB: predicated region body
PF: predicated region fallthrough
CT: control target
= control target key end

     0   :  { %15 = vsyncpa [#allocation5], 0  ;;  %s293_s23 = smov [#allocation4]   ;;  %s359_s0 = inlined_call_operand.<no memory space> [shape: s32[1], index: 0, kind: input, shape index: {}]   ;;  %s360_s1 = inlined_call_operand.<no memory space> [shape: f32[1], index: 1, kind: input, shape index: {}]   ;;  %s361_s2 = inlined_call_operand.vmem [shape: bf16[16,128], index: 2, kind: input, shape index: {}]   ;;  %s362_s3 = inlined_call_operand.hbm [shape: bf16[128,128], index: 3, kind: input, shape index: {}]   ;;  %s363_s4 = inlined_call_operand.vmem [shape: f32[1,128], index: 4, kind: input, shape index: {}]   ;;  %s364_s5 = inlined_call_operand.vmem [shape: bf16[16,128], index: 5, kind: output, shape index: {0}]   ;;  %s365_s6 = inlined_call_operand.vmem [shape: f32[1,1,128], index: 6, kind: output, shape index: {1}]   ;;  %s366_s7 = inlined_call_operand.vmem [shape: f32[1,1,128], index: 7, kind: output, shape index: {2}]  }
   0x1   :  { %s27_s24 = sshll.u32 %s293_s23, 4  ;;  %s28_s24 = int_to_ptr.vmem [resolvable:$true] %s27_s24 }
   0x2   :  { %s279_s25 = scalar_lea.vmem %s28_s24, 1024  ;;  %p284_p1 = scmp.lt.s32.totalorder %s28_s24, %s28_s24 }
   0x3   :  { %p280_p0 = scmp.ne.s32.totalorder %s28_s24, %s279_s25  ;;  %p285_p2 = scmp.lt.s32.totalorder %s279_s25, %s279_s25 }
   0x5   :  { %p286_p3 = por %p285_p2, %p284_p1 }
   0x7   :  { %p287_p4 = pnand %p286_p3, %p280_p0 }
   0x9   :  { %290 = shalt.err (!%p287_p4)
}
   0xa   :  { %s294_s26 = smov 64   ;;  %s295_s27 = smov 4  }
   0xb   :  { %33 = dma.hbm_to_vmem [thread:$0]  %s362_s3, 1024, %s28_s24, [#allocation5], %s294_s26, %s294_s26, %s295_s27  }
   0xc   :  { %291 = dma.done.wait [#allocation5], 1024  }
   0xd   :  { %292 = vsyncadd [#allocation5], 4294966272  ;;  %v296_v0 = vmov 0.0   ;;  %vm297_vm0 = vmmov 0   ;;  %v262_v1 = vld [vmem:[#allocation4 + $0x38] sm:$0xff]   ;;  %v263_v2 = vld [vmem:[#allocation4 + $0x30] sm:$0xff]   ;;  %v163_v12 = vstv %s360_s1 }
   0xe   :  { %237 = vmatprep.subr.bf16.mxu0 %v296_v0  ;;  %253 = vmatprep.mubr.msk.bf16.mxu0 %vm297_vm0, %v296_v0  ;;  %v264_v3 = vld [vmem:[#allocation4 + $0x28] sm:$0xff]   ;;  %v265_v4 = vld [vmem:[#allocation4 + $0x20] sm:$0xff]   ;;  %v266_v5 = vld [vmem:[#allocation4 + $0x18] sm:$0xff]  }
   0xf   :  { %238 = vmatpush3.bf16.msra.mxu0 %v262_v1  ;;  %v267_v6 = vld [vmem:[#allocation4 + $0x10] sm:$0xff]   ;;  %v268_v7 = vld [vmem:[#allocation4 + $0x8] sm:$0xff]   ;;  %v269_v8 = vld [vmem:[#allocation4] sm:$0xff]  }
  0x10   :  { %239 = vmatprep.subr.bf16.mxu0 %v296_v0  ;;  %v270_v9 = vld [vmem:[%s361_s2] sm:$0xff]  }
  0x11   :  { %v209_v10 = vld [vmem:[%s363_s4] ss:$0 sm:$0xff] }
  0x13   :  { %240 = vmatpush3.bf16.msra.mxu0 %v263_v2 }
  0x14   :  { %241 = vmatprep.subr.bf16.mxu0 %v296_v0 }
  0x17   :  { %242 = vmatpush3.bf16.msra.mxu0 %v264_v3 }
  0x18   :  { %243 = vmatprep.subr.bf16.mxu0 %v296_v0 }
  0x1b   :  { %244 = vmatpush3.bf16.msra.mxu0 %v265_v4 }
  0x1c   :  { %245 = vmatprep.subr.bf16.mxu0 %v296_v0 }
  0x1f   :  { %246 = vmatpush3.bf16.msra.mxu0 %v266_v5 }
  0x20   :  { %247 = vmatprep.subr.bf16.mxu0 %v296_v0 }
  0x23   :  { %248 = vmatpush3.bf16.msra.mxu0 %v267_v6 }
  0x24   :  { %249 = vmatprep.subr.bf16.mxu0 %v296_v0 }
  0x27   :  { %250 = vmatpush3.bf16.msra.mxu0 %v268_v7 }
  0x28   :  { %251 = vmatprep.subr.bf16.mxu0 %v296_v0 }
  0x2b   :  { %252 = vmatpush3.bf16.msra.mxu0 %v269_v8 }
  0x2e   :  { %254 = vmatmul.mubr.bf16.vlgmr.msra.gmra.mxu0 %v270_v9 }
  0xee   :  { %v153_v11 = vpop.f32.mrf.mxu0 }
  0xef   :  { %v154_v13 = vadd.f32 %v209_v10, %v153_v11 }
  0xf0   :  { %v255_v14 = vpop.f32.mrf.mxu0 }
  0xf1   :  { %v164_v15 = vmul.f32 %v163_v12, %v154_v13  ;;  %vm161_vm1 = vcmp.ge.f32.partialorder %v154_v13, 0.0 }
  0xf2   :  { %v156_v16 = vpop.f32.mrf.mxu0 }
  0xf3   :  { %v157_v17 = vadd.f32 %v209_v10, %v156_v16  ;;  %v166_v19 = vsel %vm161_vm1, %v154_v13, %v164_v15 }
  0xf4   :  { %v256_v18 = vpop.f32.mrf.mxu0  ;;  %v186_v22 = vmul.f32 %v166_v19, %v166_v19 }
  0xf5   :  { %vm162_vm2 = vcmp.ge.f32.partialorder %v157_v17, 0.0  ;;  %v165_v20 = vmul.f32 %v163_v12, %v157_v17 }
  0xf7   :  { %v167_v21 = vsel %vm162_vm2, %v157_v17, %v165_v20 }
  0xf8   :  { %v226_v23 = vpack.c.bf16 %v167_v21, %v166_v19  ;;  %v178_v24 = vadd.f32 %v167_v21, %v166_v19  ;;  %v187_v25 = vmul.f32 %v167_v21, %v167_v21 }
  0xfa   :  { %227 = vst [vmem:[%s364_s5] sm:$0xff] %v226_v23   ;;  %v179_v26 = vrot.slane %v178_v24, 4  ;;  %v188_v27 = vadd.f32 %v187_v25, %v186_v22 }
  0xfc   :  { %v180_v28 = vadd.f32 %v179_v26, %v178_v24  ;;  %v189_v29 = vrot.slane %v188_v27, 4 }
  0xfe   :  { %v181_v30 = vrot.slane %v180_v28, 2  ;;  %v190_v31 = vadd.f32 %v189_v29, %v188_v27 }
 0x100   :  { %v182_v32 = vadd.f32 %v181_v30, %v180_v28  ;;  %v191_v33 = vrot.slane %v190_v31, 2 }
 0x102   :  { %v183_v34 = vrot.slane %v182_v32, 1  ;;  %v192_v35 = vadd.f32 %v191_v33, %v190_v31 }
 0x104   :  { %v184_v36 = vadd.f32 %v183_v34, %v182_v32  ;;  %v193_v37 = vrot.slane %v192_v35, 1 }
 0x106   :  { %185 = vst [vmem:[%s365_s6] sm:$0x1] %v184_v36  ;;  %v194_v38 = vadd.f32 %v193_v37, %v192_v35 }
 0x108   :  { %195 = vst [vmem:[%s366_s7] sm:$0x1] %v194_v38 }
 0x109   :  { %208 = vsyncpa [#allocation5], 1 }

</bundles_post_ra>
